<compile_context>
chip_gen: v5e
topology: v5e:2x2
jax: 0.10.0
libtpu: 0.0.40
codegen_flags: <defaults>
</compile_context>

<pallas_src>
import functools

import jax
import jax.numpy as jnp
from jax.experimental import pallas as pl
from jax.experimental.pallas import tpu as pltpu


_POOL_CHUNK = 512  # lanes per pooled-sum chunk (bounds the f32 temporary)


def _vmem_capacity_bytes():
    try:
        return int(pltpu.get_tpu_info().vmem_capacity_bytes)
    except Exception:
        return 64 << 20  # conservative fallback (v7x per-TC VMEM)


def _pooled_sum_f32(x_ref):
    """Chunk-wise f32 spatial sum over the lane axis of a (Bb, C, HW) ref.

    Static slices keep the f32 temporary to at most (Bb, C, _POOL_CHUNK)
    instead of materializing an f32 copy of the whole tile.
    """
    hw = x_ref.shape[-1]
    acc = None
    for start in range(0, hw, _POOL_CHUNK):
        size = min(_POOL_CHUNK, hw - start)
        part = jnp.sum(x_ref[:, :, start:start + size].astype(jnp.float32),
                       axis=-1)
        acc = part if acc is None else acc + part
    return acc


# --------------------------- fused single-pass ------------------------------

def _se_fused_kernel(x_ref, w1t_ref, w2t_ref, o_ref, *, inv_hw):
    # x_ref: (Bb, C, HW) tile in native dtype (HW may be lane-ragged; Mosaic
    # masks the tail vreg on loads/stores).
    pooled = _pooled_sum_f32(x_ref) * inv_hw                          # (Bb, C)

    h = jnp.dot(pooled, w1t_ref[...],
                preferred_element_type=jnp.float32)                   # (Bb, hidden)
    h = h * jax.nn.sigmoid(h)                                         # SiLU
    g = jax.nn.sigmoid(jnp.dot(h, w2t_ref[...],
                               preferred_element_type=jnp.float32))   # (Bb, C)

    # Re-read the ref (2nd VMEM read is free); multiply in native dtype.
    o_ref[...] = (x_ref[...] * g[..., None].astype(o_ref.dtype)).astype(o_ref.dtype)


def _choose_block_batch(B, per_image_bytes, budget_bytes):
    """Largest batch-block Bb (divisor of B) whose double-buffered in+out
    blocks fit the VMEM budget, preferring grid shapes that balance v7x's two
    TensorCores (even grid, >= 4 steps when possible).  Returns None if even
    a single image does not fit (caller uses the two-pass fallback)."""
    feasible = [bb for bb in range(1, B + 1)
                if B % bb == 0 and 4 * bb * per_image_bytes <= budget_bytes]
    if not feasible:
        return None
    for pred in (lambda g: g % 2 == 0 and g >= 4,
                 lambda g: g % 2 == 0,
                 lambda g: g >= 2,
                 lambda g: True):
        cands = [bb for bb in feasible if pred(B // bb)]
        if cands:
            return max(cands)


# --------------------------- two-pass fallback ------------------------------

def _se_gate_kernel(x_ref, w1t_ref, w2t_ref, g_ref, acc_ref, *, inv_hw, hw, thw):
    t = pl.program_id(1)

    @pl.when(t == 0)
    def _():
        acc_ref[...] = jnp.zeros_like(acc_ref)

    xs = x_ref[...].astype(jnp.float32)                               # (1, C, tHW)
    if hw % thw != 0:
        # Mask lanes past the true spatial extent (OOB block reads are garbage).
        lane = jax.lax.broadcasted_iota(jnp.int32, xs.shape, 2)
        xs = jnp.where(t * thw + lane < hw, xs, 0.0)
    acc_ref[...] += jnp.sum(xs, axis=-1)                              # (1, C)

    @pl.when(t == pl.num_programs(1) - 1)
    def _():
        pooled = acc_ref[...] * inv_hw                                # (1, C)
        h = jnp.dot(pooled, w1t_ref[...], preferred_element_type=jnp.float32)
        h = h * jax.nn.sigmoid(h)                                     # SiLU
        g = jax.nn.sigmoid(jnp.dot(h, w2t_ref[...],
                                   preferred_element_type=jnp.float32))
        g_ref[...] = g[:, None, :]                                    # (1, 1, C)


def _se_apply_kernel(x_ref, g_ref, o_ref):
    g = g_ref[...][:, 0, :, None]                                     # (1, C, 1)
    o_ref[...] = (x_ref[...] * g.astype(o_ref.dtype)).astype(o_ref.dtype)


# --------------------------------- wrapper ----------------------------------

def squeeze_excitation(x, w1, w2, *, vmem_block_budget_bytes=None,
                       donate_x=False):
    """x: (B, C, H, W); w1: (hidden, C); w2: (C, hidden). PyTorch Linear layout.

    Set donate_x=True (and donate x at the jit boundary) to alias the output
    onto x's HBM buffer via input_output_aliases.
    """
    B, C, H, W = x.shape
    HW = H * W
    hidden = w1.shape[0]
    dtype = x.dtype
    itemsize = jnp.dtype(dtype).itemsize

    # Weights: pre-transpose + pre-cast once (resident in VMEM across steps).
    w1t = w1.T.astype(jnp.float32)   # (C, hidden)
    w2t = w2.T.astype(jnp.float32)   # (hidden, C)
    weight_bytes = (w1t.size + w2t.size) * 4

    # VMEM budget derived from the chip's capacity (64 MiB v7x, 128 MiB v5e/v6e).
    vmem_cap = _vmem_capacity_bytes()
    if vmem_block_budget_bytes is None:
        vmem_block_budget_bytes = int(vmem_cap * 0.6)
    vmem_limit = min(vmem_block_budget_bytes + 2 * weight_bytes + (6 << 20),
                     int(vmem_cap * 0.9))

    x_flat = x.reshape(B, C, HW)     # contiguous reshape: no HBM traffic
    per_image_bytes = C * HW * itemsize
    inv_hw = 1.0 / HW
    io_alias = {0: 0} if donate_x else {}

    Bb = _choose_block_batch(B, per_image_bytes, vmem_block_budget_bytes)

    if Bb is not None:
        # ---- Fused single-pass path: whole image(s) per grid step ----------
        cost = pl.CostEstimate(
            flops=2 * B * C * HW + 4 * B * hidden * C,
            transcendentals=B * (hidden + C),
            bytes_accessed=2 * B * C * HW * itemsize + weight_bytes,
        )
        out_flat = pl.pallas_call(
            functools.partial(_se_fused_kernel, inv_hw=inv_hw),
            out_shape=jax.ShapeDtypeStruct((B, C, HW), dtype),
            grid_spec=pltpu.PrefetchScalarGridSpec(
                num_scalar_prefetch=0,
                grid=(B // Bb,),
                in_specs=[
                    pl.BlockSpec((Bb, C, HW), lambda b: (b, 0, 0)),
                    pl.BlockSpec((C, hidden), lambda b: (0, 0)),
                    pl.BlockSpec((hidden, C), lambda b: (0, 0)),
                ],
                out_specs=pl.BlockSpec((Bb, C, HW), lambda b: (b, 0, 0)),
            ),
            compiler_params=pltpu.CompilerParams(
                dimension_semantics=("parallel",),
                vmem_limit_bytes=vmem_limit,
            ),
            cost_estimate=cost,
            input_output_aliases=io_alias,
        )(x_flat, w1t, w2t)
        return out_flat.reshape(B, C, H, W)

    # ---- Two-pass fallback: single image slab exceeds the VMEM budget ------
    thw = max(128, (vmem_block_budget_bytes // (6 * C * itemsize)) // 128 * 128)
    thw = min(thw, ((HW + 127) // 128) * 128)
    n_t = pl.cdiv(HW, thw)

    gate = pl.pallas_call(
        functools.partial(_se_gate_kernel, inv_hw=inv_hw, hw=HW, thw=thw),
        out_shape=jax.ShapeDtypeStruct((B, 1, C), jnp.float32),
        grid_spec=pltpu.PrefetchScalarGridSpec(
            num_scalar_prefetch=0,
            grid=(B, n_t),
            in_specs=[
                pl.BlockSpec((1, C, thw), lambda b, t: (b, 0, t)),
                pl.BlockSpec((C, hidden), lambda b, t: (0, 0)),
                pl.BlockSpec((hidden, C), lambda b, t: (0, 0)),
            ],
            out_specs=pl.BlockSpec((1, 1, C), lambda b, t: (b, 0, 0)),
            scratch_shapes=[pltpu.VMEM((1, C), jnp.float32)],
        ),
        compiler_params=pltpu.CompilerParams(
            dimension_semantics=("parallel", "arbitrary"),
            vmem_limit_bytes=vmem_limit,
        ),
        cost_estimate=pl.CostEstimate(
            flops=2 * B * C * HW + 4 * B * hidden * C,
            transcendentals=B * (hidden + C),
            bytes_accessed=B * C * HW * itemsize + weight_bytes + B * C * 4,
        ),
    )(x_flat, w1t, w2t)

    out_flat = pl.pallas_call(
        _se_apply_kernel,
        out_shape=jax.ShapeDtypeStruct((B, C, HW), dtype),
        grid_spec=pltpu.PrefetchScalarGridSpec(
            num_scalar_prefetch=0,
            grid=(B, n_t),
            in_specs=[
                pl.BlockSpec((1, C, thw), lambda b, t: (b, 0, t)),
                pl.BlockSpec((1, 1, C), lambda b, t: (b, 0, 0)),
            ],
            out_specs=pl.BlockSpec((1, C, thw), lambda b, t: (b, 0, t)),
        ),
        compiler_params=pltpu.CompilerParams(
            dimension_semantics=("parallel", "parallel"),
            vmem_limit_bytes=vmem_limit,
        ),
        cost_estimate=pl.CostEstimate(
            flops=B * C * HW,
            transcendentals=0,
            bytes_accessed=2 * B * C * HW * itemsize + B * C * 4,
        ),
        input_output_aliases=io_alias,
    )(x_flat, gate)
    return out_flat.reshape(B, C, H, W)


def squeeze_excitation_ref(x, w1, w2):
    # Pure-JAX reference mirroring the PyTorch module.
    pooled = jnp.mean(x.astype(jnp.float32), axis=(2, 3))   # (B, C)
    h = pooled @ w1.T.astype(jnp.float32)                   # (B, hidden)
    h = h * jax.nn.sigmoid(h)                                # SiLU
    g = jax.nn.sigmoid(h @ w2.T.astype(jnp.float32))         # (B, C)
    return x * g[:, :, None, None].astype(x.dtype)


if __name__ == "__main__":
    key = jax.random.PRNGKey(0)

    def run_case(B, C, H, W, shrinkage_rate=0.25, **kwargs):
        hidden = max(1, int(C * shrinkage_rate))
        kx, k1, k2 = jax.random.split(
            jax.random.fold_in(key, B * 10007 + H * 131 + C), 3)
        x = jax.random.normal(kx, (B, C, H, W), dtype=jnp.float32)
        # PyTorch Linear layout: (out_features, in_features)
        w1 = jax.random.normal(k1, (hidden, C), dtype=jnp.float32) / (C ** 0.5)
        w2 = jax.random.normal(k2, (C, hidden), dtype=jnp.float32) / (hidden ** 0.5)

        out = jax.block_until_ready(squeeze_excitation(x, w1, w2, **kwargs))
        ref = squeeze_excitation_ref(x, w1, w2)
        assert out.shape == (B, C, H, W)
        assert jnp.allclose(out, ref, atol=1e-5, rtol=1e-5), (
            f"mismatch vs reference for shape {(B, C, H, W)} kwargs={kwargs}")

    run_case(2, 8, 16, 16)    # lane-aligned HW=256, fused single-pass path
    run_case(2, 8, 14, 14)    # ragged HW=196: masked tail vreg, no wrapper pad
    run_case(3, 8, 16, 16)    # odd batch: exercises grid-choice heuristic
    run_case(2, 8, 14, 14,    # force the two-pass (pool -> gate -> apply) fallback
             vmem_block_budget_bytes=16 << 10)

    print("KERNEL_OK")
</pallas_src>

<mosaic_0001>
module attributes {stable_mosaic.version = 11 : i64} {
  func.func @_se_fused_kernel(%arg0: i32, %arg1: memref<1x8x256xf32, #tpu.memory_space<vmem>>, %arg2: memref<8x2xf32, #tpu.memory_space<vmem>>, %arg3: memref<2x8xf32, #tpu.memory_space<vmem>>, %arg4: memref<1x8x256xf32, #tpu.memory_space<vmem>>) attributes {dimension_semantics = [#tpu.dimension_semantics<parallel>], iteration_bounds = array<i64: 2>, scalar_prefetch = 0 : i64, scratch_operands = 0 : i64, tpu.core_type = #tpu.core_type<tc>, window_params = [{transform_indices = @transform_0, window_bounds = array<i64: 1, 8, 256>}, {pipeline_mode = #tpu.pipeline_mode<synchronous>, transform_indices = @transform_1, window_bounds = array<i64: 8, 2>}, {pipeline_mode = #tpu.pipeline_mode<synchronous>, transform_indices = @transform_2, window_bounds = array<i64: 2, 8>}, {transform_indices = @transform_3, window_bounds = array<i64: 1, 8, 256>}]} {
    %c0 = arith.constant 0 : index
    %c0_0 = arith.constant 0 : index
    %c0_1 = arith.constant 0 : index
    %0 = vector.load %arg1[%c0, %c0_0, %c0_1] : memref<1x8x256xf32, #tpu.memory_space<vmem>>, vector<1x8x256xf32>
    %cst = arith.constant dense<0.000000e+00> : vector<1x8xf32>
    %1 = vector.multi_reduction <add>, %0, %cst [2] : vector<1x8x256xf32> to vector<1x8xf32>
    %cst_2 = arith.constant 3.906250e-03 : f32
    %2 = vector.broadcast %cst_2 : f32 to vector<1x8xf32>
    %3 = arith.mulf %1, %2 : vector<1x8xf32>
    %c0_3 = arith.constant 0 : index
    %c0_4 = arith.constant 0 : index
    %4 = vector.load %arg2[%c0_3, %c0_4] : memref<8x2xf32, #tpu.memory_space<vmem>>, vector<8x2xf32>
    %cst_5 = arith.constant dense<0.000000e+00> : vector<1x2xf32>
    %5 = tpu.matmul %3, %4, %cst_5 {dimension_numbers = #tpu.dot_dimension_numbers<[1], [0], [0], [1], [0, 0, 1, 1], [], []>} : vector<1x8xf32>, vector<8x2xf32>, vector<1x2xf32> -> vector<1x2xf32>
    %6 = arith.negf %5 : vector<1x2xf32>
    %7 = math.exp %6 : vector<1x2xf32>
    %cst_6 = arith.constant 1.000000e+00 : f32
    %8 = vector.broadcast %cst_6 : f32 to vector<1x2xf32>
    %9 = arith.addf %8, %7 : vector<1x2xf32>
    %10 = arith.divf %8, %9 : vector<1x2xf32>
    %11 = arith.mulf %5, %10 : vector<1x2xf32>
    %c0_7 = arith.constant 0 : index
    %c0_8 = arith.constant 0 : index
    %12 = vector.load %arg3[%c0_7, %c0_8] : memref<2x8xf32, #tpu.memory_space<vmem>>, vector<2x8xf32>
    %cst_9 = arith.constant dense<0.000000e+00> : vector<1x8xf32>
    %13 = tpu.matmul %11, %12, %cst_9 {dimension_numbers = #tpu.dot_dimension_numbers<[1], [0], [0], [1], [0, 0, 1, 1], [], []>} : vector<1x2xf32>, vector<2x8xf32>, vector<1x8xf32> -> vector<1x8xf32>
    %14 = arith.negf %13 : vector<1x8xf32>
    %15 = math.exp %14 : vector<1x8xf32>
    %cst_10 = arith.constant 1.000000e+00 : f32
    %16 = vector.broadcast %cst_10 : f32 to vector<1x8xf32>
    %17 = arith.addf %16, %15 : vector<1x8xf32>
    %18 = arith.divf %16, %17 : vector<1x8xf32>
    %c0_11 = arith.constant 0 : index
    %c0_12 = arith.constant 0 : index
    %c0_13 = arith.constant 0 : index
    %19 = vector.load %arg1[%c0_11, %c0_12, %c0_13] : memref<1x8x256xf32, #tpu.memory_space<vmem>>, vector<1x8x256xf32>
    %20 = vector.shape_cast %18 : vector<1x8xf32> to vector<1x8x1xf32>
    %21 = vector.broadcast %20 : vector<1x8x1xf32> to vector<1x8x256xf32>
    %22 = arith.mulf %19, %21 : vector<1x8x256xf32>
    %c0_14 = arith.constant 0 : index
    %c0_15 = arith.constant 0 : index
    %c0_16 = arith.constant 0 : index
    %23 = vector.load %arg4[%c0_14, %c0_15, %c0_16] : memref<1x8x256xf32, #tpu.memory_space<vmem>>, vector<1x8x256xf32>
    tpu.vector_store %arg4[%c0_14, %c0_15, %c0_16], %22 {strides = array<i32>} : memref<1x8x256xf32, #tpu.memory_space<vmem>>, vector<1x8x256xf32>,
    return
  }
  func.func @transform_0(%arg0: i32) -> (i32, i32, i32) {
    %c0_i32 = arith.constant 0 : i32
    %c0_i32_0 = arith.constant 0 : i32
    %c0_i32_1 = arith.constant 0 : i32
    return %arg0, %c0_i32, %c0_i32_0 : i32, i32, i32
  }
  func.func @transform_1(%arg0: i32) -> (i32, i32) {
    %c0_i32 = arith.constant 0 : i32
    %c0_i32_0 = arith.constant 0 : i32
    %c0_i32_1 = arith.constant 0 : i32
    return %c0_i32, %c0_i32_0 : i32, i32
  }
  func.func @transform_2(%arg0: i32) -> (i32, i32) {
    %c0_i32 = arith.constant 0 : i32
    %c0_i32_0 = arith.constant 0 : i32
    %c0_i32_1 = arith.constant 0 : i32
    return %c0_i32, %c0_i32_0 : i32, i32
  }
  func.func @transform_3(%arg0: i32) -> (i32, i32, i32) {
    %c0_i32 = arith.constant 0 : i32
    %c0_i32_0 = arith.constant 0 : i32
    %c0_i32_1 = arith.constant 0 : i32
    return %arg0, %c0_i32, %c0_i32_0 : i32, i32, i32
  }
}

</mosaic_0001>

<bundles_post_ra>
// kernel: tpu_custom_call.1
= control target key start
LH: loop header
LB: loop body
LE: loop exit
PB: predicated region body
PF: predicated region fallthrough
CT: control target
= control target key end

     0   :  { %8 = vsyncpa [#allocation3], 0  ;;  %s728_s0 = inlined_call_operand.hbm [shape: f32[2,8,256], index: 0, kind: input, shape index: {}]   ;;  %s729_s1 = inlined_call_operand.vmem [shape: f32[8,2], index: 1, kind: input, shape index: {}]   ;;  %s730_s2 = inlined_call_operand.vmem [shape: f32[2,8], index: 2, kind: input, shape index: {}]   ;;  %s731_s3 = inlined_call_operand.hbm [shape: f32[2,8,256], index: 3, kind: output, shape index: {}]  }
   0x1   :  { %10 = vsyncpa [#allocation3 + $0x1], 0 }
   0x2   :  { %11 = vsyncpa [#allocation4], 0 }
   0x3   :  { %13 = vsyncpa [#allocation4 + $0x1], 0  ;;  %s583_s12 = smov 0   ;;  %s585_s13 = smov 0  }
   0x4   :  { %s587_s14 = smov 0   ;;  %s589_s15 = smov 0  }
   0x5 LB: > { %s604_s16 = sadd.s32 4294967295, %s561_s15   ;;  %s389_s17 = sadd.s32 4294967294, %s561_s15   ;;  %s561_s15 = sphi %s589_s15, %s741_s15   ;;  %s557_s14 = sphi %s587_s14, %s740_s14   ;;  %s553_s13 = sphi %s585_s13, %s739_s13   ;;  %s549_s12 = sphi %s583_s12, %s738_s12  }
   0x6   : > { %s608_s18 = sadd.s32 1, %s561_s15   ;;  %s26_s19 = sadd.s32 1, %s557_s14 }
   0x7   : > { %s23_s20 = ssub.s32 %s561_s15, %s608_s18  ;;  %p33_p0 = scmp.ne.s32.totalorder %s557_s14, %s553_s13 }
   0x8   : > { %p24_p1 = scmp.eq.s32.totalorder %s23_s20, 0  ;;  %p34_p2 = scmp.eq.s32.totalorder %s561_s15, 0 }
   0x9   : > { %p39_p3 = scmp.ne.s32.totalorder %s553_s13, %s549_s12  ;;  %p40_p4 = scmp.eq.s32.totalorder %s604_s16, 0 }
   0xa   : > { %s620_s21 = scalar_select %p24_p1, %s557_s14, %s26_s19  }
   0xb   : > { %p622_p5 = por %p34_p2, %p33_p0  ;;  %p626_p6 = por %p40_p4, %p39_p3 }
   0xc   : > { %p105_p7 = scmp.eq.s32.totalorder %s604_s16, 1  ;;  %p111_p8 = scmp.eq.s32.totalorder %s389_s17, 1 }
   0xd   : > { %p422_p10 = scmp.lt.s32.totalorder %s561_s15, 2  ;;  %s137_s26 = sand.u32 1, %s557_s14  }
   0xe   : > { %p633_p11 = por %p105_p7, %p33_p0  ;;  %p637_p12 = por %p111_p8, %p39_p3 }
   0xf   : > { %s408_s27 = sshll.u32 %s561_s15, 4  ;;  %s392_s28 = sshll.u32 %s137_s26, 4 }
  0x10   : > { %s146_s4 = scalar_lea.hbm %s728_s0, %s408_s27  ;;  %s141_s6 = scalar_lea.vmem [#allocation2], %s392_s28 }
  0x11   : > { %s148_s5 = sshll.u32 %s146_s4, 4  ;;  %s150_s7 = sshll.u32 %s141_s6, 4  ;;  %s149_s5 = int_to_ptr.hbm [resolvable:$true] %s148_s5  ;;  %s151_s7 = int_to_ptr.vmem [resolvable:$true] %s150_s7 }
  0x12   : > { %p648_p13 = pnand %p422_p10, %p622_p5  ;;  %p395_p0 = scmp.ge.s32.totalorder %s561_s15, 1 }
  0x13   : > { %p155_p1 = scmp.lt.s32.totalorder %s561_s15, 3  ;;  %s138_s9 = scalar_lea.sflag [#allocation3], %s137_s26 }
  0x14   : > { %s465_s10 = sshra.s32 %s149_s5, 4  ;;  %p469_p3 = pneg %p648_p13  ;;  %s466_s10 = int_to_ptr.hbm [resolvable:$true] %s465_s10 }
  0x15   : > { %s467_s11 = scalar_lea.hbm %s466_s10, 16  ;;  %s472_s20 = scalar_lea.hbm %s728_s0, 32 }
  0x16   : > { %p468_p2 = scmp.ne.s32.totalorder %s466_s10, %s467_s11  ;;  %p473_p5 = scmp.lt.s32.totalorder %s466_s10, %s728_s0 }
  0x17   : > { %p474_p8 = scmp.lt.s32.totalorder %s472_s20, %s467_s11 }
  0x18   : > { %p470_p4 = pnand %p469_p3, %p468_p2 }
  0x19   : > { %p475_p10 = por %p474_p8, %p473_p5 }
  0x1a   : > { %p471_p7 = pneg %p470_p4 }
  0x1c   : > { %p476_p9 = pnand %p475_p10, %p471_p7 }
  0x1e   : > { %479 = shalt.err (!%p476_p9)
}
  0x1f   : > { %417 = dma.hbm_to_vmem [thread:$0]  (!%p648_p13), %s149_s5, 256, %s151_s7, %s138_s9  }
  0x20   : > { %p156_p2 = pnand %p395_p0, %p155_p1 }
  0x21   : > { %s669_s26 = sand.u32 (!%p156_p2), 1, %s553_s13  }
  0x22   : > { %159 = sbr.rel (%p156_p2) target bundleno = 596 (0x254), region = 32  ;;  %s396_s28 = sshll.u32 (!%p156_p2), %s669_s26, 4 }
  0x23   : > { %s162_s29 = scalar_lea.sflag (!%p156_p2), [#allocation3], %s669_s26  ;;  %s165_s30 = scalar_lea.vmem (!%p156_p2), [#allocation2], %s396_s28 }
  0x27   : > { %540 = dma.done.wait (%p626_p6), %s162_s29, 256  }
  0x28   : > { %542 = vsyncadd (%p626_p6), %s162_s29, 4294967040  ;;  %v679_v0 = vld [vmem:[%s165_s30] sm:$0xff]  ;;  %v681_v1 = vld [vmem:[%s165_s30 + $0x8] sm:$0xff]  ;;  %v197_v4 = vlaneseq  ;;  %vm200_vm0 = vcmask 64512   ;;  %vm248_vm1 = vcmask 1041408   ;;  %vm244_vm6 = vcmask 15360  }
  0x29   : > { %v191_v2 = vadd.f32 %v681_v1, %v679_v0  ;;  %v195_v3 = vld [vmem:[%s729_s1] sm:$0xff]  ;;  %s409_s7 = sshll.u32 %s604_s16, 4  ;;  %s188_s11 = scalar_lea.vmem [#allocation5], %s396_s28 }
  0x2a   : > { %218 = vmatpush.msra.mxu0 %v195_v3  ;;  %v198_v5 = vand.u32 127, %v197_v4  ;;  %v243_v9 = vld [vmem:[%s730_s2] sm:$0x3]  ;;  %v293_v25 = vshrl.u32 %v197_v4, 7  ;;  %s314_s10 = scalar_lea.hbm %s731_s3, %s409_s7  ;;  %s316_s17 = sshll.u32 %s188_s11, 4  ;;  %s317_s17 = int_to_ptr.vmem [resolvable:$true] %s316_s17 }
  0x2b   : > { %192 = vadd.xlane.f32.xlu0 %v191_v2  ;;  %400 = vmatpush.msk.msra.mxu1 %vm248_vm1, %v243_v9  ;;  %s318_s19 = sshll.u32 %s314_s10, 4  ;;  %s303_s20 = scalar_lea.sflag [#allocation4], %s669_s26  ;;  %s319_s19 = int_to_ptr.hbm [resolvable:$true] %s318_s19 }
  0x2c   : > { %456 = vset.pattern.permute.xlu0 %v293_v25  ;;  %s509_s16 = sshra.s32 %s319_s19, 4  ;;  %s515_s29 = scalar_lea.hbm %s731_s3, 32  ;;  %s510_s16 = int_to_ptr.hbm [resolvable:$true] %s509_s16 }
  0x2d   : > { %s511_s22 = scalar_lea.hbm %s510_s16, 16  ;;  %p516_p0 = scmp.lt.s32.totalorder %s510_s16, %s731_s3 }
  0x2e   : > { %p512_p6 = scmp.ne.s32.totalorder %s510_s16, %s511_s22  ;;  %p517_p1 = scmp.lt.s32.totalorder %s515_s29, %s511_s22 }
  0x30   : > { %p513_p9 = pnand %p512_p6, %p633_p11  ;;  %p518_p3 = por %p517_p1, %p516_p0 }
  0x32   : > { %p514_p13 = pneg %p513_p9 }
  0x34   : > { %p519_p4 = pnand %p518_p3, %p514_p13 }
  0x9e   : > { %v193_v6 = vpop.xlane.xlu0 %192 }
  0x9f   : > { %v194_v7 = vmul.f32 0.00390625, %v193_v6 }
  0xa1   : > { %v199_v8 = vperm.slane %v194_v7, %v198_v5 }
  0xa3   : > { %398 = vmatmul.msk.f32.vlgmr.msra.gmra.mxu0 %vm200_vm0, %v199_v8 }
 0x120   : > { %v220_v10 = vpop.f32.mrf.mxu0 }
 0x121   : > { %v399_v11 = vmul.f32 -1.442695, %v220_v10 }
 0x123   : > { %457 = vpow2.f32 %v399_v11 }
 0x129   : > { %v458_v12 = vpop.eup %457 }
 0x12a   : > { %v226_v13 = vadd.f32 1.0, %v458_v12 }
 0x12c   : > { %459 = vrcp.f32 %v226_v13  ;;  %v238_v17 = vand.u32 2147483648, %v226_v13  ;;  %v236_v19 = vand.u32 2147483647, %v226_v13  ;;  %vm232_vm3 = vweird.f32 %v226_v13 }
 0x12e   : > { %v239_v21 = vor.u32 1.1754944e-38, %v238_v17  ;;  %vm237_vm5 = vcmp.eq.f32.partialorder %v236_v19, 8.507059e+37 }
 0x132   : > { %v460_v14 = vpop.eup %459 }
 0x133   : > { %v228_v15 = vmul.f32 %v460_v14, %v226_v13  ;;  %vm233_vm2 = vweird.f32 %v460_v14 }
 0x134   : > { %vm234_vm4 = vmor %vm232_vm3, %vm233_vm2 }
 0x135   : > { %v229_v16 = vsub.f32 1.0, %v228_v15 }
 0x137   : > { %v230_v18 = vmul.f32 %v460_v14, %v229_v16 }
 0x139   : > { %v231_v20 = vadd.f32 %v460_v14, %v230_v18 }
 0x13b   : > { %v235_v22 = vsel %vm234_vm4, %v460_v14, %v231_v20 }
 0x13c   : > { %v240_v23 = vsel %vm237_vm5, %v239_v21, %v235_v22 }
 0x13d   : > { %v242_v24 = vmul.f32 %v240_v23, %v220_v10 }
 0x13f   : > { %401 = vmatmul.msk.f32.vlgmr.msra.gmra.mxu1 %vm244_vm6, %v242_v24 }
 0x1bc   : > { %v269_v26 = vpop.f32.mrf.mxu1 }
 0x1bd   : > { %v402_v27 = vmul.f32 -1.442695, %v269_v26 }
 0x1bf   : > { %461 = vpow2.f32 %v402_v27 }
 0x1c5   : > { %v462_v28 = vpop.eup %461 }
 0x1c6   : > { %v275_v29 = vadd.f32 1.0, %v462_v28 }
 0x1c8   : > { %463 = vrcp.f32 %v275_v29  ;;  %v287_v33 = vand.u32 2147483648, %v275_v29  ;;  %v285_v35 = vand.u32 2147483647, %v275_v29  ;;  %vm281_vm8 = vweird.f32 %v275_v29 }
 0x1ca   : > { %v288_v37 = vor.u32 1.1754944e-38, %v287_v33  ;;  %vm286_vm10 = vcmp.eq.f32.partialorder %v285_v35, 8.507059e+37 }
 0x1ce   : > { %v464_v30 = vpop.eup %463 }
 0x1cf   : > { %v277_v31 = vmul.f32 %v464_v30, %v275_v29  ;;  %vm282_vm7 = vweird.f32 %v464_v30 }
 0x1d0   : > { %vm283_vm9 = vmor %vm281_vm8, %vm282_vm7 }
 0x1d1   : > { %v278_v32 = vsub.f32 1.0, %v277_v31 }
 0x1d3   : > { %v279_v34 = vmul.f32 %v464_v30, %v278_v32 }
 0x1d5   : > { %v280_v36 = vadd.f32 %v464_v30, %v279_v34 }
 0x1d7   : > { %v284_v38 = vsel %vm283_vm9, %v464_v30, %v280_v36 }
 0x1d8   : > { %v289_v39 = vsel %vm286_vm10, %v288_v37, %v284_v38 }
 0x1d9   : > { %v291_v40 = vperm.slane %v289_v39, 0 }
 0x1db   : > { %296 = vperm.xlu0 %456, %v291_v40  }
 0x24d   : > { %v297_v41 = vpop.permute.xlu0 %296 }
 0x24e   : > { %v298_v42 = vmul.f32 %v297_v41, %v679_v0  ;;  %v299_v43 = vmul.f32 %v297_v41, %v681_v1 }
 0x250   : > { %300 = vst [vmem:[%s188_s11] sm:$0xff] %v298_v42 }
 0x251   : > { %301 = vst [vmem:[%s188_s11 + $0x8] sm:$0xff] %v299_v43 }
 0x252   : > { %522 = shalt.err (!%p519_p4)
}
 0x253   : > { %412 = dma.vmem_to_hbm [thread:$0]  (%p633_p11), %s317_s17, 256, %s319_s19, %s303_s20  }
 0x254 PF: > { %s330_s26 = sand.u32 1, %s549_s12   ;;  %p737_p7 = scmp.ge.s32.totalorder %s561_s15, 2 }
 0x255   : > { %s331_s5 = scalar_lea.sflag [#allocation4], %s330_s26 }
 0x256   : > { %p419_p5 = pnand %p737_p7, %p637_p12 }
 0x258   : > { %p420_p8 = pneg %p419_p5 }
 0x25a   : > { %544 = dma.done.wait (%p420_p8), %s331_s5, 256  }
 0x25b   : > { %546 = vsyncadd (%p420_p8), %s331_s5, 4294967040  ;;  %p16_p10 = scmp.ge.s32.totalorder %s608_s18, 4   ;;  %s738_s12 = smov %s553_s13 }
 0x25c   : > { %s739_s13 = smov %s557_s14  ;;  %s740_s14 = smov %s620_s21 }
 0x25d   : > { %s741_s15 = smov %s608_s18  ;;  %18 = sbr.rel (!%p16_p10) target bundleno = 5 (0x5), region = 77 }
 0x262   :  { %337 = vsyncpa [#allocation3], 1 }
 0x263   :  { %339 = vsyncpa [#allocation3 + $0x1], 1 }
 0x264   :  { %340 = vsyncpa [#allocation4], 1 }
 0x265   :  { %342 = vsyncpa [#allocation4 + $0x1], 1 }

</bundles_post_ra>
